<compile_context>
chip_gen: v6e
topology: v6e:2x2x1
jax: 0.10.0
libtpu: 0.0.40
codegen_flags: <defaults>
</compile_context>

<pallas_src>
import jax
import jax.numpy as jnp
import numpy as np
from jax.experimental import pallas as pl
from jax.experimental.pallas import tpu as pltpu


def make_lstm_fc_kernel(T, Bp, H):
    """Returns a kernel closed over the static sizes (time loop fully unrolled)."""

    def kernel(x_ref, h0_ref, c0_ref, wihT_ref, whhT_ref, bias_ref,
               wfcT_ref, bfc_ref,
               y_ref, h_out_ref, c_out_ref):
        # Loop-invariant recurrent weight (pre-transposed: (H, 4H)).
        whhT = whhT_ref[...]

        # Hoisted input projection for ALL timesteps.  I == 1, so this is a
        # VPU broadcast multiply-add, not a padded K=1 MXU matmul:
        #   (T*Bp, 1) * (1, 4H) + (1, 4H) -> (T*Bp, 4H), kept in vregs.
        xg = x_ref[...] * wihT_ref[...] + bias_ref[...]

        # Loop-invariant lane masks: fuse all four gate nonlinearities into a
        # single tanh per step using sigmoid(x) = 0.5*tanh(0.5*x) + 0.5 (the
        # same identity XLA uses to lower logistic).  g-lanes (2H..3H) keep
        # plain tanh via scale=1 / offset=0.
        lane = jax.lax.broadcasted_iota(jnp.int32, (Bp, 4 * H), 1)
        is_g = jnp.logical_and(lane >= 2 * H, lane < 3 * H)
        scale = jnp.where(is_g, 1.0, 0.5).astype(jnp.float32)    # pre & post scale
        offset = jnp.where(is_g, 0.0, 0.5).astype(jnp.float32)   # post offset

        h = h0_ref[...]                                          # (Bp, H)
        c = c0_ref[...]                                          # (Bp, H)
        hs = []

        # Fully-unrolled recurrence (T=8): only the h-dependent matmul, one
        # tanh and a few VALU ops remain on the serial dependency chain.
        # Every slice below is static and (8,128)-aligned because Bp == 8.
        for t in range(T):
            xg_t = xg[t * Bp:(t + 1) * Bp, :]                    # (Bp, 4H) static slice
            gates = xg_t + jnp.dot(h, whhT,
                                   preferred_element_type=jnp.float32)
            tg = jnp.tanh(gates * scale)
            act = tg * scale + offset                            # [sig | sig | tanh | sig]
            i_g = act[:, 0 * H:1 * H]
            f_g = act[:, 1 * H:2 * H]
            g_g = act[:, 2 * H:3 * H]
            o_g = act[:, 3 * H:4 * H]
            c = f_g * c + i_g * g_g
            h = o_g * jnp.tanh(c)
            hs.append(h)

        # Final state written exactly once.
        h_out_ref[...] = h
        c_out_ref[...] = c

        # fc1 over all timesteps as one (T*Bp, H) @ (H, 128) matmul; the
        # output dim is zero-padded to 128 lanes so the store is lane-dense.
        hall = jnp.concatenate(hs, axis=0)                       # (T*Bp, H)
        y_ref[...] = (jnp.dot(hall, wfcT_ref[...],
                              preferred_element_type=jnp.float32)
                      + bfc_ref[...])

    return kernel


def net_forward(x, state, params):
    """x: (T, B, I) f32; state: (h0, c0) each (B, H); returns (y (T,B,O), (h, c))."""
    h0, c0 = state
    wih, whh, bih, bhh, wfc, bfc = params
    T, B, I = x.shape
    H = h0.shape[-1]
    O = wfc.shape[0]

    # --- Wrapper-side, loop-invariant layout prep ----------------------------
    # Pad batch to the sublane granule (8): padded rows are independent batch
    # rows (cannot contaminate valid ones) and cost zero extra vreg work, but
    # make every per-step tile exactly one (8,128)-aligned vreg group.
    Bp = max(8, ((B + 7) // 8) * 8)
    # Pad fc1 output dim to a full 128-lane tile so y is computed/stored dense.
    Op = max(128, ((O + 127) // 128) * 128)

    x_pad = jnp.zeros((T, Bp, I), jnp.float32).at[:, :B, :].set(x)
    h0_pad = jnp.zeros((Bp, H), jnp.float32).at[:B, :].set(h0)
    c0_pad = jnp.zeros((Bp, H), jnp.float32).at[:B, :].set(c0)

    x2 = x_pad.reshape(T * Bp, I)                 # (T*Bp, 1)
    wihT = wih.T                                  # (I, 4H) = (1, 4H)
    whhT = whh.T                                  # (H, 4H) pre-transposed
    bias = (bih + bhh).reshape(1, 4 * H)          # fused LSTM bias
    wfcT = jnp.zeros((H, Op), jnp.float32).at[:, :O].set(wfc.T)
    bfc2 = jnp.zeros((1, Op), jnp.float32).at[:, :O].set(bfc.reshape(1, O))

    vmem = pl.BlockSpec(memory_space=pltpu.MemorySpace.VMEM)

    y2, h_out, c_out = pl.pallas_call(
        make_lstm_fc_kernel(T, Bp, H),
        out_shape=(
            jax.ShapeDtypeStruct((T * Bp, Op), jnp.float32),
            jax.ShapeDtypeStruct((Bp, H), jnp.float32),
            jax.ShapeDtypeStruct((Bp, H), jnp.float32),
        ),
        in_specs=[vmem] * 8,
        out_specs=(vmem, vmem, vmem),
        # Whole problem (< 100 KiB) lives in VMEM; no grid / pipelining needed.
    )(x2, h0_pad, c0_pad, wihT, whhT, bias, wfcT, bfc2)

    y = y2.reshape(T, Bp, Op)[:, :B, :O]
    return y, (h_out[:B, :], c_out[:B, :])


def reference_forward(x, state, params):
    """Plain-JAX reference (standard LSTM + Linear) for verification."""
    h0, c0 = state
    wih, whh, bih, bhh, wfc, bfc = params
    H = h0.shape[-1]

    def step(carry, x_t):
        h, c = carry
        gates = x_t @ wih.T + h @ whh.T + bih + bhh
        i = jax.nn.sigmoid(gates[:, 0 * H:1 * H])
        f = jax.nn.sigmoid(gates[:, 1 * H:2 * H])
        g = jnp.tanh(gates[:, 2 * H:3 * H])
        o = jax.nn.sigmoid(gates[:, 3 * H:4 * H])
        c_new = f * c + i * g
        h_new = o * jnp.tanh(c_new)
        return (h_new, c_new), h_new

    (h, c), hs = jax.lax.scan(step, (h0, c0), x)
    y = hs @ wfc.T + bfc
    return y, (h, c)


if __name__ == "__main__":
    # Small shapes consistent with the module: inp_size=1, out_size=9, hid_size=32.
    T, B, I, H, O = 8, 2, 1, 32, 9

    key = jax.random.PRNGKey(0)
    ks = jax.random.split(key, 9)
    bound = 1.0 / np.sqrt(H)
    u = lambda k, shape: jax.random.uniform(k, shape, jnp.float32, -bound, bound)

    wih = u(ks[0], (4 * H, I))
    whh = u(ks[1], (4 * H, H))
    bih = u(ks[2], (4 * H,))
    bhh = u(ks[3], (4 * H,))
    wfc = u(ks[4], (O, H))
    bfc = u(ks[5], (O,))
    params = (wih, whh, bih, bhh, wfc, bfc)

    x = jax.random.normal(ks[6], (T, B, I), jnp.float32)
    h0 = jax.random.normal(ks[7], (B, H), jnp.float32)
    c0 = jax.random.normal(ks[8], (B, H), jnp.float32)

    y, (h, c) = net_forward(x, (h0, c0), params)
    jax.block_until_ready((y, h, c))

    y_ref, (h_ref, c_ref) = reference_forward(x, (h0, c0), params)
    np.testing.assert_allclose(np.asarray(y), np.asarray(y_ref), rtol=1e-5, atol=1e-5)
    np.testing.assert_allclose(np.asarray(h), np.asarray(h_ref), rtol=1e-5, atol=1e-5)
    np.testing.assert_allclose(np.asarray(c), np.asarray(c_ref), rtol=1e-5, atol=1e-5)

    print("KERNEL_OK")
</pallas_src>

<mosaic_0001>
module attributes {stable_mosaic.version = 11 : i64} {
  func.func @kernel(%arg0: memref<64x1xf32, #tpu.memory_space<vmem>>, %arg1: memref<8x32xf32, #tpu.memory_space<vmem>>, %arg2: memref<8x32xf32, #tpu.memory_space<vmem>>, %arg3: memref<1x128xf32, #tpu.memory_space<vmem>>, %arg4: memref<32x128xf32, #tpu.memory_space<vmem>>, %arg5: memref<1x128xf32, #tpu.memory_space<vmem>>, %arg6: memref<32x128xf32, #tpu.memory_space<vmem>>, %arg7: memref<1x128xf32, #tpu.memory_space<vmem>>, %arg8: memref<64x128xf32, #tpu.memory_space<vmem>>, %arg9: memref<8x32xf32, #tpu.memory_space<vmem>>, %arg10: memref<8x32xf32, #tpu.memory_space<vmem>>) attributes {dimension_semantics = [], scalar_prefetch = 0 : i64, scratch_operands = 0 : i64, tpu.core_type = #tpu.core_type<tc>} {
    %c0 = arith.constant 0 : index
    %c0_0 = arith.constant 0 : index
    %0 = vector.load %arg4[%c0, %c0_0] : memref<32x128xf32, #tpu.memory_space<vmem>>, vector<32x128xf32>
    %c0_1 = arith.constant 0 : index
    %c0_2 = arith.constant 0 : index
    %1 = vector.load %arg0[%c0_1, %c0_2] : memref<64x1xf32, #tpu.memory_space<vmem>>, vector<64x1xf32>
    %c0_3 = arith.constant 0 : index
    %c0_4 = arith.constant 0 : index
    %2 = vector.load %arg3[%c0_3, %c0_4] : memref<1x128xf32, #tpu.memory_space<vmem>>, vector<1x128xf32>
    %3 = vector.broadcast %1 : vector<64x1xf32> to vector<64x128xf32>
    %4 = vector.broadcast %2 : vector<1x128xf32> to vector<64x128xf32>
    %5 = arith.mulf %3, %4 : vector<64x128xf32>
    %c0_5 = arith.constant 0 : index
    %c0_6 = arith.constant 0 : index
    %6 = vector.load %arg5[%c0_5, %c0_6] : memref<1x128xf32, #tpu.memory_space<vmem>>, vector<1x128xf32>
    %7 = vector.broadcast %6 : vector<1x128xf32> to vector<64x128xf32>
    %8 = arith.addf %5, %7 : vector<64x128xf32>
    %9 = tpu.iota {dimensions = array<i32: 1>} : vector<8x128xi32>
    %c64_i32 = arith.constant 64 : i32
    %10 = vector.broadcast %c64_i32 : i32 to vector<8x128xi32>
    %11 = arith.cmpi sge, %9, %10 : vector<8x128xi32>
    %c96_i32 = arith.constant 96 : i32
    %12 = vector.broadcast %c96_i32 : i32 to vector<8x128xi32>
    %13 = arith.cmpi slt, %9, %12 : vector<8x128xi32>
    %14 = arith.andi %11, %13 : vector<8x128xi1>
    %cst = arith.constant 1.000000e+00 : f32
    %cst_7 = arith.constant 5.000000e-01 : f32
    %15 = vector.broadcast %cst : f32 to vector<8x128xf32>
    %16 = vector.broadcast %cst_7 : f32 to vector<8x128xf32>
    %17 = arith.select %14, %15, %16 : vector<8x128xi1>, vector<8x128xf32>
    %cst_8 = arith.constant 0.000000e+00 : f32
    %cst_9 = arith.constant 5.000000e-01 : f32
    %18 = vector.broadcast %cst_8 : f32 to vector<8x128xf32>
    %19 = vector.broadcast %cst_9 : f32 to vector<8x128xf32>
    %20 = arith.select %14, %18, %19 : vector<8x128xi1>, vector<8x128xf32>
    %c0_10 = arith.constant 0 : index
    %c0_11 = arith.constant 0 : index
    %21 = vector.load %arg1[%c0_10, %c0_11] : memref<8x32xf32, #tpu.memory_space<vmem>>, vector<8x32xf32>
    %c0_12 = arith.constant 0 : index
    %c0_13 = arith.constant 0 : index
    %22 = vector.load %arg2[%c0_12, %c0_13] : memref<8x32xf32, #tpu.memory_space<vmem>>, vector<8x32xf32>
    %23 = vector.extract_strided_slice %8 {offsets = [0, 0], sizes = [8, 128], strides = [1, 1]} : vector<64x128xf32> to vector<8x128xf32>
    %cst_14 = arith.constant dense<0.000000e+00> : vector<8x128xf32>
    %24 = tpu.matmul %21, %0, %cst_14 {dimension_numbers = #tpu.dot_dimension_numbers<[1], [0], [0], [1], [0, 0, 1, 1], [], []>} : vector<8x32xf32>, vector<32x128xf32>, vector<8x128xf32> -> vector<8x128xf32>
    %25 = arith.addf %23, %24 : vector<8x128xf32>
    %26 = arith.mulf %25, %17 : vector<8x128xf32>
    %27 = math.tanh %26 : vector<8x128xf32>
    %28 = arith.mulf %27, %17 : vector<8x128xf32>
    %29 = arith.addf %28, %20 : vector<8x128xf32>
    %30 = vector.extract_strided_slice %29 {offsets = [0, 0], sizes = [8, 32], strides = [1, 1]} : vector<8x128xf32> to vector<8x32xf32>
    %31 = vector.extract_strided_slice %29 {offsets = [0, 32], sizes = [8, 32], strides = [1, 1]} : vector<8x128xf32> to vector<8x32xf32>
    %32 = vector.extract_strided_slice %29 {offsets = [0, 64], sizes = [8, 32], strides = [1, 1]} : vector<8x128xf32> to vector<8x32xf32>
    %33 = vector.extract_strided_slice %29 {offsets = [0, 96], sizes = [8, 32], strides = [1, 1]} : vector<8x128xf32> to vector<8x32xf32>
    %34 = arith.mulf %31, %22 : vector<8x32xf32>
    %35 = arith.mulf %30, %32 : vector<8x32xf32>
    %36 = arith.addf %34, %35 : vector<8x32xf32>
    %37 = math.tanh %36 : vector<8x32xf32>
    %38 = arith.mulf %33, %37 : vector<8x32xf32>
    %39 = vector.extract_strided_slice %8 {offsets = [8, 0], sizes = [8, 128], strides = [1, 1]} : vector<64x128xf32> to vector<8x128xf32>
    %cst_15 = arith.constant dense<0.000000e+00> : vector<8x128xf32>
    %40 = tpu.matmul %38, %0, %cst_15 {dimension_numbers = #tpu.dot_dimension_numbers<[1], [0], [0], [1], [0, 0, 1, 1], [], []>} : vector<8x32xf32>, vector<32x128xf32>, vector<8x128xf32> -> vector<8x128xf32>
    %41 = arith.addf %39, %40 : vector<8x128xf32>
    %42 = arith.mulf %41, %17 : vector<8x128xf32>
    %43 = math.tanh %42 : vector<8x128xf32>
    %44 = arith.mulf %43, %17 : vector<8x128xf32>
    %45 = arith.addf %44, %20 : vector<8x128xf32>
    %46 = vector.extract_strided_slice %45 {offsets = [0, 0], sizes = [8, 32], strides = [1, 1]} : vector<8x128xf32> to vector<8x32xf32>
    %47 = vector.extract_strided_slice %45 {offsets = [0, 32], sizes = [8, 32], strides = [1, 1]} : vector<8x128xf32> to vector<8x32xf32>
    %48 = vector.extract_strided_slice %45 {offsets = [0, 64], sizes = [8, 32], strides = [1, 1]} : vector<8x128xf32> to vector<8x32xf32>
    %49 = vector.extract_strided_slice %45 {offsets = [0, 96], sizes = [8, 32], strides = [1, 1]} : vector<8x128xf32> to vector<8x32xf32>
    %50 = arith.mulf %47, %36 : vector<8x32xf32>
    %51 = arith.mulf %46, %48 : vector<8x32xf32>
    %52 = arith.addf %50, %51 : vector<8x32xf32>
    %53 = math.tanh %52 : vector<8x32xf32>
    %54 = arith.mulf %49, %53 : vector<8x32xf32>
    %55 = vector.extract_strided_slice %8 {offsets = [16, 0], sizes = [8, 128], strides = [1, 1]} : vector<64x128xf32> to vector<8x128xf32>
    %cst_16 = arith.constant dense<0.000000e+00> : vector<8x128xf32>
    %56 = tpu.matmul %54, %0, %cst_16 {dimension_numbers = #tpu.dot_dimension_numbers<[1], [0], [0], [1], [0, 0, 1, 1], [], []>} : vector<8x32xf32>, vector<32x128xf32>, vector<8x128xf32> -> vector<8x128xf32>
    %57 = arith.addf %55, %56 : vector<8x128xf32>
    %58 = arith.mulf %57, %17 : vector<8x128xf32>
    %59 = math.tanh %58 : vector<8x128xf32>
    %60 = arith.mulf %59, %17 : vector<8x128xf32>
    %61 = arith.addf %60, %20 : vector<8x128xf32>
    %62 = vector.extract_strided_slice %61 {offsets = [0, 0], sizes = [8, 32], strides = [1, 1]} : vector<8x128xf32> to vector<8x32xf32>
    %63 = vector.extract_strided_slice %61 {offsets = [0, 32], sizes = [8, 32], strides = [1, 1]} : vector<8x128xf32> to vector<8x32xf32>
    %64 = vector.extract_strided_slice %61 {offsets = [0, 64], sizes = [8, 32], strides = [1, 1]} : vector<8x128xf32> to vector<8x32xf32>
    %65 = vector.extract_strided_slice %61 {offsets = [0, 96], sizes = [8, 32], strides = [1, 1]} : vector<8x128xf32> to vector<8x32xf32>
    %66 = arith.mulf %63, %52 : vector<8x32xf32>
    %67 = arith.mulf %62, %64 : vector<8x32xf32>
    %68 = arith.addf %66, %67 : vector<8x32xf32>
    %69 = math.tanh %68 : vector<8x32xf32>
    %70 = arith.mulf %65, %69 : vector<8x32xf32>
    %71 = vector.extract_strided_slice %8 {offsets = [24, 0], sizes = [8, 128], strides = [1, 1]} : vector<64x128xf32> to vector<8x128xf32>
    %cst_17 = arith.constant dense<0.000000e+00> : vector<8x128xf32>
    %72 = tpu.matmul %70, %0, %cst_17 {dimension_numbers = #tpu.dot_dimension_numbers<[1], [0], [0], [1], [0, 0, 1, 1], [], []>} : vector<8x32xf32>, vector<32x128xf32>, vector<8x128xf32> -> vector<8x128xf32>
    %73 = arith.addf %71, %72 : vector<8x128xf32>
    %74 = arith.mulf %73, %17 : vector<8x128xf32>
    %75 = math.tanh %74 : vector<8x128xf32>
    %76 = arith.mulf %75, %17 : vector<8x128xf32>
    %77 = arith.addf %76, %20 : vector<8x128xf32>
    %78 = vector.extract_strided_slice %77 {offsets = [0, 0], sizes = [8, 32], strides = [1, 1]} : vector<8x128xf32> to vector<8x32xf32>
    %79 = vector.extract_strided_slice %77 {offsets = [0, 32], sizes = [8, 32], strides = [1, 1]} : vector<8x128xf32> to vector<8x32xf32>
    %80 = vector.extract_strided_slice %77 {offsets = [0, 64], sizes = [8, 32], strides = [1, 1]} : vector<8x128xf32> to vector<8x32xf32>
    %81 = vector.extract_strided_slice %77 {offsets = [0, 96], sizes = [8, 32], strides = [1, 1]} : vector<8x128xf32> to vector<8x32xf32>
    %82 = arith.mulf %79, %68 : vector<8x32xf32>
    %83 = arith.mulf %78, %80 : vector<8x32xf32>
    %84 = arith.addf %82, %83 : vector<8x32xf32>
    %85 = math.tanh %84 : vector<8x32xf32>
    %86 = arith.mulf %81, %85 : vector<8x32xf32>
    %87 = vector.extract_strided_slice %8 {offsets = [32, 0], sizes = [8, 128], strides = [1, 1]} : vector<64x128xf32> to vector<8x128xf32>
    %cst_18 = arith.constant dense<0.000000e+00> : vector<8x128xf32>
    %88 = tpu.matmul %86, %0, %cst_18 {dimension_numbers = #tpu.dot_dimension_numbers<[1], [0], [0], [1], [0, 0, 1, 1], [], []>} : vector<8x32xf32>, vector<32x128xf32>, vector<8x128xf32> -> vector<8x128xf32>
    %89 = arith.addf %87, %88 : vector<8x128xf32>
    %90 = arith.mulf %89, %17 : vector<8x128xf32>
    %91 = math.tanh %90 : vector<8x128xf32>
    %92 = arith.mulf %91, %17 : vector<8x128xf32>
    %93 = arith.addf %92, %20 : vector<8x128xf32>
    %94 = vector.extract_strided_slice %93 {offsets = [0, 0], sizes = [8, 32], strides = [1, 1]} : vector<8x128xf32> to vector<8x32xf32>
    %95 = vector.extract_strided_slice %93 {offsets = [0, 32], sizes = [8, 32], strides = [1, 1]} : vector<8x128xf32> to vector<8x32xf32>
    %96 = vector.extract_strided_slice %93 {offsets = [0, 64], sizes = [8, 32], strides = [1, 1]} : vector<8x128xf32> to vector<8x32xf32>
    %97 = vector.extract_strided_slice %93 {offsets = [0, 96], sizes = [8, 32], strides = [1, 1]} : vector<8x128xf32> to vector<8x32xf32>
    %98 = arith.mulf %95, %84 : vector<8x32xf32>
    %99 = arith.mulf %94, %96 : vector<8x32xf32>
    %100 = arith.addf %98, %99 : vector<8x32xf32>
    %101 = math.tanh %100 : vector<8x32xf32>
    %102 = arith.mulf %97, %101 : vector<8x32xf32>
    %103 = vector.extract_strided_slice %8 {offsets = [40, 0], sizes = [8, 128], strides = [1, 1]} : vector<64x128xf32> to vector<8x128xf32>
    %cst_19 = arith.constant dense<0.000000e+00> : vector<8x128xf32>
    %104 = tpu.matmul %102, %0, %cst_19 {dimension_numbers = #tpu.dot_dimension_numbers<[1], [0], [0], [1], [0, 0, 1, 1], [], []>} : vector<8x32xf32>, vector<32x128xf32>, vector<8x128xf32> -> vector<8x128xf32>
    %105 = arith.addf %103, %104 : vector<8x128xf32>
    %106 = arith.mulf %105, %17 : vector<8x128xf32>
    %107 = math.tanh %106 : vector<8x128xf32>
    %108 = arith.mulf %107, %17 : vector<8x128xf32>
    %109 = arith.addf %108, %20 : vector<8x128xf32>
    %110 = vector.extract_strided_slice %109 {offsets = [0, 0], sizes = [8, 32], strides = [1, 1]} : vector<8x128xf32> to vector<8x32xf32>
    %111 = vector.extract_strided_slice %109 {offsets = [0, 32], sizes = [8, 32], strides = [1, 1]} : vector<8x128xf32> to vector<8x32xf32>
    %112 = vector.extract_strided_slice %109 {offsets = [0, 64], sizes = [8, 32], strides = [1, 1]} : vector<8x128xf32> to vector<8x32xf32>
    %113 = vector.extract_strided_slice %109 {offsets = [0, 96], sizes = [8, 32], strides = [1, 1]} : vector<8x128xf32> to vector<8x32xf32>
    %114 = arith.mulf %111, %100 : vector<8x32xf32>
    %115 = arith.mulf %110, %112 : vector<8x32xf32>
    %116 = arith.addf %114, %115 : vector<8x32xf32>
    %117 = math.tanh %116 : vector<8x32xf32>
    %118 = arith.mulf %113, %117 : vector<8x32xf32>
    %119 = vector.extract_strided_slice %8 {offsets = [48, 0], sizes = [8, 128], strides = [1, 1]} : vector<64x128xf32> to vector<8x128xf32>
    %cst_20 = arith.constant dense<0.000000e+00> : vector<8x128xf32>
    %120 = tpu.matmul %118, %0, %cst_20 {dimension_numbers = #tpu.dot_dimension_numbers<[1], [0], [0], [1], [0, 0, 1, 1], [], []>} : vector<8x32xf32>, vector<32x128xf32>, vector<8x128xf32> -> vector<8x128xf32>
    %121 = arith.addf %119, %120 : vector<8x128xf32>
    %122 = arith.mulf %121, %17 : vector<8x128xf32>
    %123 = math.tanh %122 : vector<8x128xf32>
    %124 = arith.mulf %123, %17 : vector<8x128xf32>
    %125 = arith.addf %124, %20 : vector<8x128xf32>
    %126 = vector.extract_strided_slice %125 {offsets = [0, 0], sizes = [8, 32], strides = [1, 1]} : vector<8x128xf32> to vector<8x32xf32>
    %127 = vector.extract_strided_slice %125 {offsets = [0, 32], sizes = [8, 32], strides = [1, 1]} : vector<8x128xf32> to vector<8x32xf32>
    %128 = vector.extract_strided_slice %125 {offsets = [0, 64], sizes = [8, 32], strides = [1, 1]} : vector<8x128xf32> to vector<8x32xf32>
    %129 = vector.extract_strided_slice %125 {offsets = [0, 96], sizes = [8, 32], strides = [1, 1]} : vector<8x128xf32> to vector<8x32xf32>
    %130 = arith.mulf %127, %116 : vector<8x32xf32>
    %131 = arith.mulf %126, %128 : vector<8x32xf32>
    %132 = arith.addf %130, %131 : vector<8x32xf32>
    %133 = math.tanh %132 : vector<8x32xf32>
    %134 = arith.mulf %129, %133 : vector<8x32xf32>
    %135 = vector.extract_strided_slice %8 {offsets = [56, 0], sizes = [8, 128], strides = [1, 1]} : vector<64x128xf32> to vector<8x128xf32>
    %cst_21 = arith.constant dense<0.000000e+00> : vector<8x128xf32>
    %136 = tpu.matmul %134, %0, %cst_21 {dimension_numbers = #tpu.dot_dimension_numbers<[1], [0], [0], [1], [0, 0, 1, 1], [], []>} : vector<8x32xf32>, vector<32x128xf32>, vector<8x128xf32> -> vector<8x128xf32>
    %137 = arith.addf %135, %136 : vector<8x128xf32>
    %138 = arith.mulf %137, %17 : vector<8x128xf32>
    %139 = math.tanh %138 : vector<8x128xf32>
    %140 = arith.mulf %139, %17 : vector<8x128xf32>
    %141 = arith.addf %140, %20 : vector<8x128xf32>
    %142 = vector.extract_strided_slice %141 {offsets = [0, 0], sizes = [8, 32], strides = [1, 1]} : vector<8x128xf32> to vector<8x32xf32>
    %143 = vector.extract_strided_slice %141 {offsets = [0, 32], sizes = [8, 32], strides = [1, 1]} : vector<8x128xf32> to vector<8x32xf32>
    %144 = vector.extract_strided_slice %141 {offsets = [0, 64], sizes = [8, 32], strides = [1, 1]} : vector<8x128xf32> to vector<8x32xf32>
    %145 = vector.extract_strided_slice %141 {offsets = [0, 96], sizes = [8, 32], strides = [1, 1]} : vector<8x128xf32> to vector<8x32xf32>
    %146 = arith.mulf %143, %132 : vector<8x32xf32>
    %147 = arith.mulf %142, %144 : vector<8x32xf32>
    %148 = arith.addf %146, %147 : vector<8x32xf32>
    %149 = math.tanh %148 : vector<8x32xf32>
    %150 = arith.mulf %145, %149 : vector<8x32xf32>
    %c0_22 = arith.constant 0 : index
    %c0_23 = arith.constant 0 : index
    %151 = vector.load %arg9[%c0_22, %c0_23] : memref<8x32xf32, #tpu.memory_space<vmem>>, vector<8x32xf32>
    tpu.vector_store %arg9[%c0_22, %c0_23], %150 {strides = array<i32>} : memref<8x32xf32, #tpu.memory_space<vmem>>, vector<8x32xf32>,
    %c0_24 = arith.constant 0 : index
    %c0_25 = arith.constant 0 : index
    %152 = vector.load %arg10[%c0_24, %c0_25] : memref<8x32xf32, #tpu.memory_space<vmem>>, vector<8x32xf32>
    tpu.vector_store %arg10[%c0_24, %c0_25], %148 {strides = array<i32>} : memref<8x32xf32, #tpu.memory_space<vmem>>, vector<8x32xf32>,
    %153 = tpu.concatenate %38, %54, %70, %86, %102, %118, %134, %150 in 0 : vector<8x32xf32>, vector<8x32xf32>, vector<8x32xf32>, vector<8x32xf32>, vector<8x32xf32>, vector<8x32xf32>, vector<8x32xf32>, vector<8x32xf32> -> vector<64x32xf32>
    %c0_26 = arith.constant 0 : index
    %c0_27 = arith.constant 0 : index
    %154 = vector.load %arg6[%c0_26, %c0_27] : memref<32x128xf32, #tpu.memory_space<vmem>>, vector<32x128xf32>
    %cst_28 = arith.constant dense<0.000000e+00> : vector<64x128xf32>
    %155 = tpu.matmul %153, %154, %cst_28 {dimension_numbers = #tpu.dot_dimension_numbers<[1], [0], [0], [1], [0, 0, 1, 1], [], []>} : vector<64x32xf32>, vector<32x128xf32>, vector<64x128xf32> -> vector<64x128xf32>
    %c0_29 = arith.constant 0 : index
    %c0_30 = arith.constant 0 : index
    %156 = vector.load %arg7[%c0_29, %c0_30] : memref<1x128xf32, #tpu.memory_space<vmem>>, vector<1x128xf32>
    %157 = vector.broadcast %156 : vector<1x128xf32> to vector<64x128xf32>
    %158 = arith.addf %155, %157 : vector<64x128xf32>
    %c0_31 = arith.constant 0 : index
    %c0_32 = arith.constant 0 : index
    %159 = vector.load %arg8[%c0_31, %c0_32] : memref<64x128xf32, #tpu.memory_space<vmem>>, vector<64x128xf32>
    tpu.vector_store %arg8[%c0_31, %c0_32], %158 {strides = array<i32>} : memref<64x128xf32, #tpu.memory_space<vmem>>, vector<64x128xf32>,
    return
  }
}

</mosaic_0001>

<bundles_post_ra>
// kernel: tpu_custom_call.1
= control target key start
LH: loop header
LB: loop body
LE: loop exit
PB: predicated region body
PF: predicated region fallthrough
CT: control target
= control target key end

     0   :  { %16 = vsyncpa [#allocation3], 0  ;;  %s1802_s0 = inlined_call_operand.vmem [shape: f32[64,1], index: 0, kind: input, shape index: {}]   ;;  %s1803_s1 = inlined_call_operand.hbm [shape: f32[8,32], index: 1, kind: input, shape index: {}]   ;;  %s1804_s2 = inlined_call_operand.hbm [shape: f32[8,32], index: 2, kind: input, shape index: {}]   ;;  %s1805_s3 = inlined_call_operand.vmem [shape: f32[1,128], index: 3, kind: input, shape index: {}]   ;;  %s1806_s4 = inlined_call_operand.vmem [shape: f32[32,128], index: 4, kind: input, shape index: {}]   ;;  %s1807_s5 = inlined_call_operand.vmem [shape: f32[1,128], index: 5, kind: input, shape index: {}]   ;;  %s1808_s6 = inlined_call_operand.vmem [shape: f32[32,128], index: 6, kind: input, shape index: {}]   ;;  %s1809_s7 = inlined_call_operand.vmem [shape: f32[1,128], index: 7, kind: input, shape index: {}]   ;;  %s1810_s8 = inlined_call_operand.hbm [shape: f32[64,128], index: 8, kind: output, shape index: {0}]   ;;  %s1811_s9 = inlined_call_operand.hbm [shape: f32[8,32], index: 9, kind: output, shape index: {1}]   ;;  %s1812_s10 = inlined_call_operand.hbm [shape: f32[8,32], index: 10, kind: output, shape index: {2}]  }
   0x1   :  { %17 = vsyncpa [#allocation6], 0 }
   0x2   :  { %18 = vsyncpa [#allocation4], 0 }
   0x3   :  { %19 = vsyncpa [#allocation9], 0  ;;  %s1444_s13 = smov [#allocation2]   ;;  %s1445_s15 = smov [#allocation5]  }
   0x4   :  { %s28_s14 = sshll.u32 %s1444_s13, 4  ;;  %s38_s16 = sshll.u32 %s1445_s15, 4  ;;  %s29_s14 = int_to_ptr.vmem [resolvable:$true] %s28_s14  ;;  %s39_s16 = int_to_ptr.vmem [resolvable:$true] %s38_s16 }
   0x5   :  { %s1344_s17 = scalar_lea.vmem %s29_s14, 128  ;;  %p1349_p1 = scmp.lt.s32.totalorder %s29_s14, %s29_s14 }
   0x6   :  { %p1345_p0 = scmp.ne.s32.totalorder %s29_s14, %s1344_s17  ;;  %p1350_p2 = scmp.lt.s32.totalorder %s1344_s17, %s1344_s17 }
   0x8   :  { %p1351_p3 = por %p1350_p2, %p1349_p1 }
   0xa   :  { %p1352_p4 = pnand %p1351_p3, %p1345_p0 }
   0xc   :  { %1355 = shalt.err (!%p1352_p4)
}
   0xd   :  { %31 = dma.hbm_to_vmem [thread:$0]  %s1803_s1, 128, %s29_s14, [#allocation3]  }
   0xe   :  { %s1364_s20 = scalar_lea.vmem %s39_s16, 128  ;;  %p1369_p6 = scmp.lt.s32.totalorder %s39_s16, %s39_s16 }
   0xf   :  { %p1365_p5 = scmp.ne.s32.totalorder %s39_s16, %s1364_s20  ;;  %p1370_p7 = scmp.lt.s32.totalorder %s1364_s20, %s1364_s20 }
  0x11   :  { %p1371_p8 = por %p1370_p7, %p1369_p6 }
  0x13   :  { %p1372_p9 = pnand %p1371_p8, %p1365_p5 }
  0x15   :  { %1375 = shalt.err (!%p1372_p9)
}
  0x16   :  { %41 = dma.hbm_to_vmem [thread:$0]  %s1804_s2, 128, %s39_s16, [#allocation6]  }
  0x17   :  { %1436 = dma.done.wait [#allocation3], 128  }
  0x18   :  { %1437 = vsyncadd [#allocation3], 4294967168 }
  0x19   :  { %1438 = dma.done.wait [#allocation6], 128  }
  0x1a   :  { %1439 = vsyncadd [#allocation6], 4294967168  ;;  %v1446_v0 = vmov 0.0   ;;  %vm1447_vm0 = vmmov 0   ;;  %v1448_v1 = vmov 0   ;;  %v1528_v2 = vld [vmem:[%s1806_s4 + $0x18] sm:$0xff]  ;;  %v140_v9 = vlaneseq }
  0x1b   :  { %1180 = vmatprep.subr.mxu1 %v1446_v0  ;;  %1188 = vmatprep.mubr.msk.f32.mxu1 %vm1447_vm0, %v1446_v0  ;;  %v1533_v3 = vld [vmem:[%s1806_s4 + $0x10] sm:$0xff]  ;;  %v62_v4 = vld [vmem:[%s1802_s0] sm:$0xff]  ;;  %v1544_v5 = vld [vmem:[%s1806_s4 + $0x8] sm:$0xff]  ;;  %s1449_s29 = smov 32   ;;  %vm149_vm1 = vcmask 261120   ;;  %v1450_v16 = vmov 0.5  }
  0x1c   :  { %1302 = vset.pattern.permute.xlu0 %v1448_v1  ;;  %1202 = vmatprep.subr.mxu0 %v1446_v0  ;;  %v148_v6 = vld [vmem:[#allocation5] sm:$0xff]  ;;  %v1552_v7 = vld [vmem:[%s1806_s4] sm:$0xff]  ;;  %v141_v12 = vand.u32 127, %v140_v9  ;;  %v64_v53 = vld [vmem:[%s1802_s0 + $0x10] sm:$0xff]  ;;  %s1453_s14 = smov [#allocation8]  }
  0x1d   :  { %1210 = vmatprep.mubr.msk.f32.mxu0 %vm1447_vm0, %v1446_v0  ;;  %1303 = vset.pattern.permute.xlu1 %v1448_v1  ;;  %v147_v8 = vld [vmem:[#allocation2] sm:$0xff]  ;;  %v63_v33 = vld [vmem:[%s1802_s0 + $0x8] sm:$0xff] }
  0x1e   :  { %1181 = vmatpush3.msra.mxu1 %v1528_v2  ;;  %1203 = vmatpush3.msra.mxu0 %v1528_v2  ;;  %v1579_v10 = vld [vmem:[%s1805_s3] ss:$0 sm:$0xff]  ;;  %vm142_vm2 = vcmp.ge.s32.totalorder %v141_v12, 64  ;;  %vm143_vm3 = vcmp.lt.s32.totalorder %v141_v12, 96  ;;  %s1451_s3 = smov 64  }
  0x1f   :  { %1182 = vmatprep.subr.mxu1 %v1446_v0  ;;  %73 = vperm.xlu0 %1302, %v62_v4   ;;  %v1585_v14 = vld [vmem:[%s1807_s5] ss:$0 sm:$0xff]  ;;  %vm144_vm4 = vmand %vm142_vm2, %vm143_vm3  ;;  %s1082_s5 = sshll.u32 %s1453_s14, 4  ;;  %s1083_s5 = int_to_ptr.vmem [resolvable:$true] %s1082_s5 }
  0x20   :  { %1183 = vmatpush3.msra.mxu1 %v1533_v3  ;;  %229 = vrot.lane.b32.xlu1 %v148_v6, %s1449_s29  ;;  %v1588_v17 = vsel %vm144_vm4, 1.0, %v1450_v16  ;;  %v1591_v23 = vsel %vm144_vm4, 0.0, %v1450_v16  ;;  %v65_v16 = vld [vmem:[%s1802_s0 + $0x18] sm:$0xff]  ;;  %s1376_s15 = scalar_lea.vmem %s1083_s5, 128  ;;  %p1381_p11 = scmp.lt.s32.totalorder %s1083_s5, %s1083_s5 }
  0x21   :  { %1184 = vmatprep.subr.mxu1 %v1446_v0  ;;  %1204 = vmatprep.subr.mxu0 %v1446_v0  ;;  %p1377_p10 = scmp.ne.s32.totalorder %s1083_s5, %s1376_s15  ;;  %p1382_p12 = scmp.lt.s32.totalorder %s1376_s15, %s1376_s15 }
  0x22   :  { %1185 = vmatpush3.msra.mxu1 %v1544_v5  ;;  %1205 = vmatpush3.msra.mxu0 %v1533_v3 }
  0x23   :  { %1186 = vmatprep.subr.mxu1 %v1446_v0  ;;  %1206 = vmatprep.subr.mxu0 %v1446_v0  ;;  %p1383_p13 = por %p1382_p12, %p1381_p11 }
  0x24   :  { %1187 = vmatpush3.msra.mxu1 %v1552_v7  ;;  %1207 = vmatpush3.msra.mxu0 %v1544_v5 }
  0x25   :  { %1189 = vmatmul.mubr.msk.f32.vlgmr.msra.gmra.mxu1 %vm149_vm1, %v147_v8  ;;  %1191 = vmatprep.subr.mxu1 %v1446_v0  ;;  %p1384_p0 = pnand %p1383_p13, %p1377_p10 }
  0x26   :  { %1192 = vmatpush3.msra.mxu1 %v1528_v2  ;;  %1199 = vmatprep.mubr.msk.f32.mxu1 %vm1447_vm0, %v1446_v0 }
  0x27   :  { %1193 = vmatprep.subr.mxu1 %v1446_v0  ;;  %1208 = vmatprep.subr.mxu0 %v1446_v0 }
  0x28   :  { %1194 = vmatpush3.msra.mxu1 %v1533_v3  ;;  %1209 = vmatpush3.msra.mxu0 %v1552_v7 }
  0x29   :  { %1195 = vmatprep.subr.mxu1 %v1446_v0  ;;  %1224 = vmatprep.subr.mxu0 %v1446_v0 }
  0x2a   :  { %1196 = vmatpush3.msra.mxu1 %v1544_v5 }
  0x2b   :  { %1197 = vmatprep.subr.mxu1 %v1446_v0 }
  0x2c   :  { %1198 = vmatpush3.msra.mxu1 %v1552_v7 }
  0x2d   :  { %1213 = vmatprep.subr.mxu1 %v1446_v0 }
  0x92   :  { %v230_v28 = vpop.permute.xlu1 %229 }
  0x9a   :  { %v74_v11 = vpop.permute.xlu0 %73 }
  0x9b   :  { %v117_v13 = vmul.f32 %v1579_v10, %v74_v11 }
  0x9d   :  { %v132_v15 = vadd.f32 %v1585_v14, %v117_v13 }
  0xe5   :  { %v219_v18 = vpop.f32.mrf.mxu1 }
  0xe6   :  { %v223_v19 = vadd.f32 %v219_v18, %v132_v15 }
  0xe7   :  { %v1190_v20 = vpop.f32.mrf.mxu1 }
  0xe8   :  { %v224_v21 = vmul.f32 %v223_v19, %v1588_v17 }
  0xea   :  { %1304 = vtanh.f32 %v224_v21 }
  0xf7   :  { %v1305_v22 = vpop.eup %1304 }
  0xf8   :  { %v226_v24 = vmul.f32 %v1305_v22, %v1588_v17 }
  0xfa   :  { %v227_v25 = vadd.f32 %v226_v24, %v1591_v23 }
  0xfc   :  { %234 = vrot.lane.b32.xlu0 %v227_v25, %s1451_s3  ;;  %v232_v29 = vmul.f32 %v230_v28, %v227_v25 }
 0x16e   :  { %v235_v26 = vpop.permute.xlu0 %234 }
 0x16f   :  { %v237_v27 = vmul.f32 %v235_v26, %v227_v25 }
 0x171   :  { %239 = vrot.lane.b32.xlu1 %v237_v27, %s1449_s29 }
 0x1e3   :  { %v240_v30 = vpop.permute.xlu1 %239 }
 0x1e4   :  { %v242_v31 = vadd.f32 %v240_v30, %v232_v29 }
 0x1e6   :  { %1306 = vtanh.f32 %v242_v31 }
 0x1f3   :  { %v1307_v32 = vpop.eup %1306 }
 0x1f4   :  { %245 = vrot.lane.b32.xlu0 %v1307_v32, %s1451_s3 }
 0x1f8   :  { %78 = vperm.xlu0 %1302, %v63_v33  }
 0x266   :  { %v246_v34 = vpop.permute.xlu0 %245 }
 0x267   :  { %v248_v35 = vmul.f32 %v246_v34, %v227_v25 }
 0x269   :  { %250 = vrot.lane.b32.xlu1 %v248_v35, %s1449_s29 }
 0x273   :  { %v79_v37 = vpop.permute.xlu0 %78 }
 0x274   :  { %v118_v38 = vmul.f32 %v1579_v10, %v79_v37 }
 0x276   :  { %v133_v39 = vadd.f32 %v1585_v14, %v118_v38 }
 0x2db   :  { %v1602_v36 = vpop.permute.xlu1 %250 }
 0x2dc   :  { %1200 = vmatmul.mubr.msk.f32.vlgmr.msra.gmra.mxu1 %vm149_vm1, %v1602_v36 }
 0x2dd   :  { %1214 = vmatpush3.msra.mxu1 %v1528_v2  ;;  %1221 = vmatprep.mubr.msk.f32.mxu1 %vm1447_vm0, %v1446_v0 }
 0x2de   :  { %1215 = vmatprep.subr.mxu1 %v1446_v0 }
 0x2df   :  { %1216 = vmatpush3.msra.mxu1 %v1533_v3 }
 0x2e0   :  { %1217 = vmatprep.subr.mxu1 %v1446_v0 }
 0x2e1   :  { %1218 = vmatpush3.msra.mxu1 %v1544_v5 }
 0x2e2   :  { %1219 = vmatprep.subr.mxu1 %v1446_v0 }
 0x2e3   :  { %1220 = vmatpush3.msra.mxu1 %v1552_v7 }
 0x2e4   :  { %1235 = vmatprep.subr.mxu1 %v1446_v0 }
 0x39c   :  { %v320_v40 = vpop.f32.mrf.mxu1 }
 0x39d   :  { %v324_v41 = vadd.f32 %v320_v40, %v133_v39  ;;  %v66_v39 = vld [vmem:[%s1802_s0 + $0x20] sm:$0xff] }
 0x39e   :  { %v1201_v42 = vpop.f32.mrf.mxu1 }
 0x39f   :  { %v325_v43 = vmul.f32 %v324_v41, %v1588_v17 }
 0x3a1   :  { %1308 = vtanh.f32 %v325_v43 }
 0x3ae   :  { %v1309_v44 = vpop.eup %1308 }
 0x3af   :  { %v327_v45 = vmul.f32 %v1309_v44, %v1588_v17 }
 0x3b1   :  { %v328_v46 = vadd.f32 %v327_v45, %v1591_v23 }
 0x3b3   :  { %331 = vrot.lane.b32.xlu1 %v328_v46, %s1451_s3  ;;  %v329_v49 = vmul.f32 %v328_v46, %v242_v31 }
 0x425   :  { %v332_v47 = vpop.permute.xlu1 %331 }
 0x426   :  { %v334_v48 = vmul.f32 %v332_v47, %v328_v46 }
 0x428   :  { %336 = vrot.lane.b32.xlu0 %v334_v48, %s1449_s29 }
 0x49a   :  { %v337_v50 = vpop.permute.xlu0 %336 }
 0x49b   :  { %v339_v51 = vadd.f32 %v337_v50, %v329_v49 }
 0x49d   :  { %1310 = vtanh.f32 %v339_v51 }
 0x4aa   :  { %v1311_v52 = vpop.eup %1310 }
 0x4ab   :  { %342 = vrot.lane.b32.xlu1 %v1311_v52, %s1451_s3 }
 0x4af   :  { %83 = vperm.xlu1 %1303, %v64_v53  }
 0x51d   :  { %v343_v54 = vpop.permute.xlu1 %342 }
 0x51e   :  { %v345_v55 = vmul.f32 %v343_v54, %v328_v46 }
 0x520   :  { %347 = vrot.lane.b32.xlu0 %v345_v55, %s1449_s29 }
 0x52a   :  { %v84_v57 = vpop.permute.xlu1 %83 }
 0x52b   :  { %v119_v58 = vmul.f32 %v1579_v10, %v84_v57 }
 0x52d   :  { %v134_v59 = vadd.f32 %v1585_v14, %v119_v58 }
 0x592   :  { %v1628_v56 = vpop.permute.xlu0 %347 }
 0x593   :  { %1211 = vmatmul.mubr.msk.f32.vlgmr.msra.gmra.mxu0 %vm149_vm1, %v1628_v56 }
 0x594   :  { %1225 = vmatpush3.msra.mxu0 %v1528_v2  ;;  %1232 = vmatprep.mubr.msk.f32.mxu0 %vm1447_vm0, %v1446_v0 }
 0x595   :  { %1226 = vmatprep.subr.mxu0 %v1446_v0 }
 0x596   :  { %1227 = vmatpush3.msra.mxu0 %v1533_v3 }
 0x597   :  { %1228 = vmatprep.subr.mxu0 %v1446_v0 }
 0x598   :  { %1229 = vmatpush3.msra.mxu0 %v1544_v5 }
 0x599   :  { %1230 = vmatprep.subr.mxu0 %v1446_v0 }
 0x59a   :  { %1231 = vmatpush3.msra.mxu0 %v1552_v7 }
 0x59b   :  { %1246 = vmatprep.subr.mxu0 %v1446_v0 }
 0x653   :  { %v417_v60 = vpop.f32.mrf.mxu0 }
 0x654   :  { %v421_v61 = vadd.f32 %v417_v60, %v134_v59  ;;  %v67_v60 = vld [vmem:[%s1802_s0 + $0x28] sm:$0xff] }
 0x655   :  { %v1212_v62 = vpop.f32.mrf.mxu0 }
 0x656   :  { %v422_v63 = vmul.f32 %v421_v61, %v1588_v17 }
 0x658   :  { %1312 = vtanh.f32 %v422_v63 }
 0x665   :  { %v1313_v1 = vpop.eup %1312 }
 0x666   :  { %v424_v4 = vmul.f32 %v1313_v1, %v1588_v17 }
 0x668   :  { %v425_v6 = vadd.f32 %v424_v4, %v1591_v23 }
 0x66a   :  { %428 = vrot.lane.b32.xlu0 %v425_v6, %s1451_s3  ;;  %v426_v11 = vmul.f32 %v425_v6, %v339_v51 }
 0x6dc   :  { %v429_v8 = vpop.permute.xlu0 %428 }
 0x6dd   :  { %v431_v9 = vmul.f32 %v429_v8, %v425_v6 }
 0x6df   :  { %433 = vrot.lane.b32.xlu1 %v431_v9, %s1449_s29 }
 0x751   :  { %v434_v12 = vpop.permute.xlu1 %433 }
 0x752   :  { %v436_v13 = vadd.f32 %v434_v12, %v426_v11 }
 0x754   :  { %1314 = vtanh.f32 %v436_v13 }
 0x761   :  { %v1315_v15 = vpop.eup %1314 }
 0x762   :  { %439 = vrot.lane.b32.xlu0 %v1315_v15, %s1451_s3 }
 0x766   :  { %88 = vperm.xlu0 %1302, %v65_v16  }
 0x7d4   :  { %v440_v18 = vpop.permute.xlu0 %439 }
 0x7d5   :  { %v442_v19 = vmul.f32 %v440_v18, %v425_v6 }
 0x7d7   :  { %444 = vrot.lane.b32.xlu1 %v442_v19, %s1449_s29  ;;  %v941_v19 = vld [vmem:[%s1808_s6 + $0x18] sm:$0xff] }
 0x7e1   :  { %v89_v21 = vpop.permute.xlu0 %88 }
 0x7e2   :  { %v120_v22 = vmul.f32 %v1579_v10, %v89_v21  ;;  %v68_v21 = vld [vmem:[%s1802_s0 + $0x30] sm:$0xff] }
 0x7e4   :  { %v135_v24 = vadd.f32 %v1585_v14, %v120_v22 }
 0x849   :  { %v1654_v20 = vpop.permute.xlu1 %444 }
 0x84a   :  { %1222 = vmatmul.mubr.msk.f32.vlgmr.msra.gmra.mxu1 %vm149_vm1, %v1654_v20 }
 0x84b   :  { %1236 = vmatpush3.msra.mxu1 %v1528_v2  ;;  %1243 = vmatprep.mubr.msk.f32.mxu1 %vm1447_vm0, %v1446_v0 }
 0x84c   :  { %1237 = vmatprep.subr.mxu1 %v1446_v0 }
 0x84d   :  { %1238 = vmatpush3.msra.mxu1 %v1533_v3 }
 0x84e   :  { %1239 = vmatprep.subr.mxu1 %v1446_v0 }
 0x84f   :  { %1240 = vmatpush3.msra.mxu1 %v1544_v5 }
 0x850   :  { %1241 = vmatprep.subr.mxu1 %v1446_v0 }
 0x851   :  { %1242 = vmatpush3.msra.mxu1 %v1552_v7 }
 0x852   :  { %1257 = vmatprep.subr.mxu1 %v1446_v0 }
 0x90a   :  { %v514_v25 = vpop.f32.mrf.mxu1 }
 0x90b   :  { %v518_v26 = vadd.f32 %v514_v25, %v135_v24 }
 0x90c   :  { %v1223_v27 = vpop.f32.mrf.mxu1 }
 0x90d   :  { %v519_v28 = vmul.f32 %v518_v26, %v1588_v17  ;;  %v940_v26 = vld [vmem:[%s1808_s6 + $0x10] sm:$0xff]  ;;  %v939_v27 = vld [vmem:[%s1808_s6 + $0x8] sm:$0xff] }
 0x90f   :  { %1316 = vtanh.f32 %v519_v28  ;;  %v938_v28 = vld [vmem:[%s1808_s6] sm:$0xff] }
 0x91c   :  { %v1317_v29 = vpop.eup %1316 }
 0x91d   :  { %v521_v30 = vmul.f32 %v1317_v29, %v1588_v17 }
 0x91f   :  { %v522_v31 = vadd.f32 %v521_v30, %v1591_v23 }
 0x921   :  { %525 = vrot.lane.b32.xlu1 %v522_v31, %s1451_s3  ;;  %v523_v34 = vmul.f32 %v522_v31, %v436_v13 }
 0x993   :  { %v526_v32 = vpop.permute.xlu1 %525 }
 0x994   :  { %v528_v33 = vmul.f32 %v526_v32, %v522_v31 }
 0x996   :  { %530 = vrot.lane.b32.xlu0 %v528_v33, %s1449_s29 }
 0xa08   :  { %v531_v35 = vpop.permute.xlu0 %530 }
 0xa09   :  { %v533_v37 = vadd.f32 %v531_v35, %v523_v34 }
 0xa0b   :  { %1318 = vtanh.f32 %v533_v37 }
 0xa18   :  { %v1319_v38 = vpop.eup %1318 }
 0xa19   :  { %536 = vrot.lane.b32.xlu1 %v1319_v38, %s1451_s3 }
 0xa1d   :  { %93 = vperm.xlu1 %1303, %v66_v39  }
 0xa8b   :  { %v537_v40 = vpop.permute.xlu1 %536 }
 0xa8c   :  { %v539_v41 = vmul.f32 %v537_v40, %v522_v31 }
 0xa8e   :  { %541 = vrot.lane.b32.xlu0 %v539_v41, %s1449_s29 }
 0xa98   :  { %v94_v43 = vpop.permute.xlu1 %93 }
 0xa99   :  { %v121_v44 = vmul.f32 %v1579_v10, %v94_v43 }
 0xa9b   :  { %v136_v45 = vadd.f32 %v1585_v14, %v121_v44 }
 0xb00   :  { %v1680_v42 = vpop.permute.xlu0 %541 }
 0xb01   :  { %1233 = vmatmul.mubr.msk.f32.vlgmr.msra.gmra.mxu0 %vm149_vm1, %v1680_v42 }
 0xb02   :  { %1247 = vmatpush3.msra.mxu0 %v1528_v2  ;;  %1254 = vmatprep.mubr.msk.f32.mxu0 %vm1447_vm0, %v1446_v0 }
 0xb03   :  { %1248 = vmatprep.subr.mxu0 %v1446_v0 }
 0xb04   :  { %1249 = vmatpush3.msra.mxu0 %v1533_v3 }
 0xb05   :  { %1250 = vmatprep.subr.mxu0 %v1446_v0 }
 0xb06   :  { %1251 = vmatpush3.msra.mxu0 %v1544_v5 }
 0xb07   :  { %1252 = vmatprep.subr.mxu0 %v1446_v0 }
 0xb08   :  { %1253 = vmatpush3.msra.mxu0 %v1552_v7 }
 0xb09   :  { %1268 = vmatprep.subr.mxu0 %v941_v19 }
 0xbc1   :  { %v611_v46 = vpop.f32.mrf.mxu0 }
 0xbc2   :  { %v615_v47 = vadd.f32 %v611_v46, %v136_v45 }
 0xbc3   :  { %v1234_v48 = vpop.f32.mrf.mxu0 }
 0xbc4   :  { %v616_v49 = vmul.f32 %v615_v47, %v1588_v17 }
 0xbc6   :  { %1320 = vtanh.f32 %v616_v49 }
 0xbd3   :  { %v1321_v50 = vpop.eup %1320 }
 0xbd4   :  { %v618_v51 = vmul.f32 %v1321_v50, %v1588_v17 }
 0xbd6   :  { %v619_v52 = vadd.f32 %v618_v51, %v1591_v23 }
 0xbd8   :  { %622 = vrot.lane.b32.xlu0 %v619_v52, %s1451_s3  ;;  %v620_v55 = vmul.f32 %v619_v52, %v533_v37 }
 0xc4a   :  { %v623_v53 = vpop.permute.xlu0 %622 }
 0xc4b   :  { %v625_v54 = vmul.f32 %v623_v53, %v619_v52 }
 0xc4d   :  { %627 = vrot.lane.b32.xlu1 %v625_v54, %s1449_s29 }
 0xcbf   :  { %v628_v57 = vpop.permute.xlu1 %627 }
 0xcc0   :  { %v630_v58 = vadd.f32 %v628_v57, %v620_v55  ;;  %v69_v57 = vld [vmem:[%s1802_s0 + $0x38] sm:$0xff]  ;;  %s1452_s0 = smov 96  }
 0xcc2   :  { %1322 = vtanh.f32 %v630_v58 }
 0xccf   :  { %v1323_v59 = vpop.eup %1322 }
 0xcd0   :  { %633 = vrot.lane.b32.xlu0 %v1323_v59, %s1451_s3 }
 0xcd4   :  { %98 = vperm.xlu0 %1302, %v67_v60  }
 0xd42   :  { %v634_v61 = vpop.permute.xlu0 %633 }
 0xd43   :  { %v636_v62 = vmul.f32 %v634_v61, %v619_v52 }
 0xd45   :  { %638 = vrot.lane.b32.xlu1 %v636_v62, %s1449_s29 }
 0xd4f   :  { %v99_v1 = vpop.permute.xlu0 %98 }
 0xd50   :  { %v122_v4 = vmul.f32 %v1579_v10, %v99_v1 }
 0xdb7   :  { %v639_v63 = vpop.permute.xlu1 %638 }
 0xdb8   :  { %1244 = vmatmul.mubr.msk.f32.vlgmr.msra.gmra.mxu1 %vm149_vm1, %v639_v63 }
 0xdb9   :  { %1258 = vmatpush3.msra.mxu1 %v1528_v2  ;;  %1265 = vmatprep.mubr.msk.f32.mxu1 %vm1447_vm0, %v1446_v0  ;;  %v137_v2 = vadd.f32 %v1585_v14, %v122_v4 }
 0xdba   :  { %1259 = vmatprep.subr.mxu1 %v1446_v0 }
 0xdbb   :  { %1260 = vmatpush3.msra.mxu1 %v1533_v3 }
 0xdbc   :  { %1261 = vmatprep.subr.mxu1 %v1446_v0 }
 0xdbd   :  { %1262 = vmatpush3.msra.mxu1 %v1544_v5 }
 0xdbe   :  { %1263 = vmatprep.subr.mxu1 %v1446_v0 }
 0xdbf   :  { %1264 = vmatpush3.msra.mxu1 %v1552_v7 }
 0xe78   :  { %v708_v6 = vpop.f32.mrf.mxu1 }
 0xe79   :  { %v712_v8 = vadd.f32 %v708_v6, %v137_v2 }
 0xe7a   :  { %v1245_v9 = vpop.f32.mrf.mxu1 }
 0xe7b   :  { %v713_v11 = vmul.f32 %v712_v8, %v1588_v17 }
 0xe7d   :  { %1324 = vtanh.f32 %v713_v11 }
 0xe8a   :  { %v1325_v3 = vpop.eup %1324 }
 0xe8b   :  { %v715_v12 = vmul.f32 %v1325_v3, %v1588_v17 }
 0xe8d   :  { %v716_v5 = vadd.f32 %v715_v12, %v1591_v23 }
 0xe8f   :  { %719 = vrot.lane.b32.xlu1 %v716_v5, %s1451_s3  ;;  %v717_v13 = vmul.f32 %v716_v5, %v630_v58 }
 0xf01   :  { %v720_v0 = vpop.permute.xlu1 %719 }
 0xf02   :  { %v722_v7 = vmul.f32 %v720_v0, %v716_v5 }
 0xf04   :  { %724 = vrot.lane.b32.xlu0 %v722_v7, %s1449_s29 }
 0xf76   :  { %v725_v15 = vpop.permute.xlu0 %724 }
 0xf77   :  { %v1722_v16 = vadd.f32 %v725_v15, %v717_v13 }
 0xf79   :  { %1326 = vtanh.f32 %v1722_v16 }
 0xf86   :  { %v1327_v18 = vpop.eup %1326 }
 0xf87   :  { %730 = vrot.lane.b32.xlu1 %v1327_v18, %s1451_s3 }
 0xf8b   :  { %103 = vperm.xlu1 %1303, %v68_v21  }
 0xff9   :  { %v731_v22 = vpop.permute.xlu1 %730 }
 0xffa   :  { %v733_v24 = vmul.f32 %v731_v22, %v716_v5 }
 0xffc   :  { %735 = vrot.lane.b32.xlu0 %v733_v24, %s1449_s29 }
0x106e   :  { %v736_v25 = vpop.permute.xlu0 %735 }
0x106f   :  { %1255 = vmatmul.mubr.msk.f32.vlgmr.msra.gmra.mxu0 %vm149_vm1, %v736_v25 }
0x1070   :  { %1269 = vmatpush3.msra.mxu0 %v941_v19  ;;  %1276 = vmatprep.mubr.msk.f32.mxu0 %vm149_vm1, %v1602_v36  ;;  %v104_v36 = vpop.permute.xlu1 %103 }
0x1071   :  { %1270 = vmatprep.subr.mxu0 %v940_v26  ;;  %v123_v29 = vmul.f32 %v1579_v10, %v104_v36 }
0x1072   :  { %1271 = vmatpush3.msra.mxu0 %v940_v26 }
0x1073   :  { %1272 = vmatprep.subr.mxu0 %v939_v27  ;;  %v138_v30 = vadd.f32 %v1585_v14, %v123_v29 }
0x1074   :  { %1273 = vmatpush3.msra.mxu0 %v939_v27 }
0x1075   :  { %1274 = vmatprep.subr.mxu0 %v938_v28 }
0x1076   :  { %1275 = vmatpush3.msra.mxu0 %v938_v28 }
0x1077   :  { %1277 = vmatmul.mubr.msk.f32.vlgmr.msra.gmra.mxu0 %vm149_vm1, %v1628_v56 }
0x1078   :  { %1279 = vmatprep.mubr.msk.f32.mxu0 %vm149_vm1, %v1654_v20  ;;  %v1759_v20 = vld [vmem:[%s1809_s7] ss:$0 sm:$0xff] }
0x107b   :  { %1280 = vmatmul.mubr.msk.f32.gmra.mxu0 %vm149_vm1, %v1680_v42 }
0x107c   :  { %1282 = vmatprep.mubr.msk.f32.mxu0 %vm149_vm1, %v639_v63 }
0x107f   :  { %1283 = vmatmul.mubr.msk.f32.gmra.mxu0 %vm149_vm1, %v736_v25 }
0x112f   :  { %v805_v31 = vpop.f32.mrf.mxu0 }
0x1130   :  { %v809_v32 = vadd.f32 %v805_v31, %v138_v30 }
0x1131   :  { %v1256_v33 = vpop.f32.mrf.mxu0 }
0x1132   :  { %v810_v56 = vmul.f32 %v809_v32, %v1588_v17 }
0x1134   :  { %1328 = vtanh.f32 %v810_v56 }
0x1137   :  { %v1278_v34 = vpop.f32.mrf.mxu0 }
0x1138   :  { %v1023_v35 = vadd.f32 %v1278_v34, %v1759_v20 }
0x1139   :  { %v1017_v37 = vpop.f32.mrf.mxu0 }
0x113a   :  { %1057 = vst [vmem:[#allocation7 + $0x8] sm:$0xff] %v1023_v35  ;;  %v1018_v38 = vadd.f32 %v1759_v20, %v1017_v37 }
0x113b   :  { %v1281_v39 = vpop.f32.mrf.mxu0 }
0x113c   :  { %1056 = vst [vmem:[#allocation7] sm:$0xff] %v1018_v38  ;;  %v1033_v40 = vadd.f32 %v1281_v39, %v1759_v20 }
0x113d   :  { %v1027_v41 = vpop.f32.mrf.mxu0 }
0x113e   :  { %1059 = vst [vmem:[#allocation7 + $0x18] sm:$0xff] %v1033_v40  ;;  %v1028_v42 = vadd.f32 %v1759_v20, %v1027_v41 }
0x113f   :  { %v1284_v43 = vpop.f32.mrf.mxu0 }
0x1140   :  { %1058 = vst [vmem:[#allocation7 + $0x10] sm:$0xff] %v1028_v42  ;;  %v1043_v44 = vadd.f32 %v1284_v43, %v1759_v20 }
0x1141   :  { %v1329_v45 = vpop.eup %1328  ;;  %v1037_v46 = vpop.f32.mrf.mxu0 }
0x1142   :  { %1061 = vst [vmem:[#allocation7 + $0x28] sm:$0xff] %v1043_v44  ;;  %v1038_v47 = vadd.f32 %v1759_v20, %v1037_v46  ;;  %v812_v48 = vmul.f32 %v1329_v45, %v1588_v17 }
0x1144   :  { %1060 = vst [vmem:[#allocation7 + $0x20] sm:$0xff] %v1038_v47  ;;  %v813_v49 = vadd.f32 %v812_v48, %v1591_v23 }
0x1146   :  { %816 = vrot.lane.b32.xlu0 %v813_v49, %s1451_s3  ;;  %v814_v52 = vmul.f32 %v813_v49, %v1722_v16 }
0x11b8   :  { %v817_v50 = vpop.permute.xlu0 %816 }
0x11b9   :  { %v819_v51 = vmul.f32 %v817_v50, %v813_v49 }
0x11bb   :  { %821 = vrot.lane.b32.xlu1 %v819_v51, %s1449_s29 }
0x122d   :  { %v822_v53 = vpop.permute.xlu1 %821 }
0x122e   :  { %v824_v54 = vadd.f32 %v822_v53, %v814_v52 }
0x1230   :  { %1330 = vtanh.f32 %v824_v54 }
0x123d   :  { %v1331_v55 = vpop.eup %1330 }
0x123e   :  { %827 = vrot.lane.b32.xlu0 %v1331_v55, %s1451_s3 }
0x1242   :  { %108 = vperm.xlu0 %1302, %v69_v57  }
0x12b0   :  { %v828_v58 = vpop.permute.xlu0 %827 }
0x12b1   :  { %v830_v59 = vmul.f32 %v828_v58, %v813_v49 }
0x12b3   :  { %832 = vrot.lane.b32.xlu1 %v830_v59, %s1449_s29 }
0x12bd   :  { %v109_v61 = vpop.permute.xlu0 %108 }
0x12be   :  { %v124_v62 = vmul.f32 %v1579_v10, %v109_v61 }
0x12c0   :  { %v139_v63 = vadd.f32 %v1585_v14, %v124_v62 }
0x1325   :  { %v833_v60 = vpop.permute.xlu1 %832 }
0x1326   :  { %1266 = vmatmul.mubr.msk.f32.vlgmr.msra.gmra.mxu1 %vm149_vm1, %v833_v60  ;;  %1285 = vmatprep.mubr.msk.f32.mxu0 %vm149_vm1, %v833_v60 }
0x13e6   :  { %v902_v1 = vpop.f32.mrf.mxu1 }
0x13e7   :  { %v906_v4 = vadd.f32 %v902_v1, %v139_v63 }
0x13e8   :  { %v1267_v2 = vpop.f32.mrf.mxu1 }
0x13e9   :  { %v907_v6 = vmul.f32 %v906_v4, %v1588_v17 }
0x13eb   :  { %1332 = vtanh.f32 %v907_v6 }
0x13f8   :  { %v1333_v8 = vpop.eup %1332 }
0x13f9   :  { %v909_v9 = vmul.f32 %v1333_v8, %v1588_v17 }
0x13fb   :  { %v910_v11 = vadd.f32 %v909_v9, %v1591_v23 }
0x13fd   :  { %913 = vrot.lane.b32.xlu1 %v910_v11, %s1451_s3  ;;  %v911_v10 = vmul.f32 %v910_v11, %v824_v54 }
0x146f   :  { %v914_v3 = vpop.permute.xlu1 %913 }
0x1470   :  { %v916_v12 = vmul.f32 %v914_v3, %v910_v11 }
0x1472   :  { %918 = vrot.lane.b32.xlu0 %v916_v12, %s1449_s29 }
0x14e4   :  { %v919_v5 = vpop.permute.xlu0 %918 }
0x14e5   :  { %v921_v14 = vadd.f32 %v919_v5, %v911_v10 }
0x14e7   :  { %1334 = vtanh.f32 %v921_v14 }
0x14f4   :  { %v1335_v0 = vpop.eup %1334 }
0x14f5   :  { %924 = vrot.lane.b32.xlu1 %v1335_v0, %s1451_s3 }
0x14f9   :  { %934 = vrot.lane.b32.xlu1 %v921_v14, %s1452_s0 }
0x1567   :  { %v925_v7 = vpop.permute.xlu1 %924 }
0x1568   :  { %v927_v13 = vmul.f32 %v925_v7, %v910_v11 }
0x156a   :  { %929 = vrot.lane.b32.xlu0 %v927_v13, %s1449_s29 }
0x156b   :  { %v935_v17 = vpop.permute.xlu1 %934 }
0x156c   :  { %937 = vst.msk [vmem:[#allocation10] sm:$0xff] %vm149_vm1, %v935_v17 }
0x15dc   :  { %v930_v23 = vpop.permute.xlu0 %929 }
0x15dd   :  { %932 = vst.msk [vmem:[#allocation8] sm:$0xff] %vm149_vm1, %v930_v23  ;;  %1286 = vmatmul.mubr.msk.f32.gmra.mxu0 %vm149_vm1, %v930_v23 }
0x15de   :  { %1387 = shalt.err (!%p1384_p0)
}
0x15df   :  { %1085 = dma.vmem_to_hbm [thread:$0]  %s1083_s5, 128, %s1811_s9, [#allocation9]  }
0x15e0   :  { %s1454_s16 = smov [#allocation10]  }
0x15e1   :  { %s1092_s17 = sshll.u32 %s1454_s16, 4  ;;  %s1093_s17 = int_to_ptr.vmem [resolvable:$true] %s1092_s17 }
0x15e2   :  { %s1396_s18 = scalar_lea.vmem %s1093_s17, 128  ;;  %p1401_p2 = scmp.lt.s32.totalorder %s1093_s17, %s1093_s17 }
0x15e3   :  { %p1397_p1 = scmp.ne.s32.totalorder %s1093_s17, %s1396_s18  ;;  %p1402_p3 = scmp.lt.s32.totalorder %s1396_s18, %s1396_s18 }
0x15e5   :  { %p1403_p4 = por %p1402_p3, %p1401_p2 }
0x15e7   :  { %p1404_p5 = pnand %p1403_p4, %p1397_p1 }
0x15e9   :  { %1407 = shalt.err (!%p1404_p5)
}
0x15ea   :  { %1095 = dma.vmem_to_hbm [thread:$0]  %s1093_s17, 128, %s1812_s10, [#allocation9]  }
0x15eb   :  { %s1455_s21 = smov [#allocation7]  }
0x15ec   :  { %s1069_s22 = sshll.u32 %s1455_s21, 4  ;;  %s1070_s22 = int_to_ptr.vmem [resolvable:$true] %s1069_s22 }
0x15ed   :  { %s1416_s9 = scalar_lea.vmem %s1070_s22, 1024  ;;  %p1421_p7 = scmp.lt.s32.totalorder %s1070_s22, %s1070_s22 }
0x15ee   :  { %p1417_p6 = scmp.ne.s32.totalorder %s1070_s22, %s1416_s9  ;;  %p1422_p8 = scmp.lt.s32.totalorder %s1416_s9, %s1416_s9 }
0x15f0   :  { %p1423_p9 = por %p1422_p8, %p1421_p7 }
0x15f2   :  { %p1424_p10 = pnand %p1423_p9, %p1417_p6 }
0x169d   :  { %v1287_v15 = vpop.f32.mrf.mxu0 }
0x169e   :  { %v1053_v16 = vadd.f32 %v1287_v15, %v1759_v20 }
0x169f   :  { %v1047_v18 = vpop.f32.mrf.mxu0 }
0x16a0   :  { %1063 = vst [vmem:[#allocation7 + $0x38] sm:$0xff] %v1053_v16  ;;  %v1048_v19 = vadd.f32 %v1759_v20, %v1047_v18 }
0x16a2   :  { %1062 = vst [vmem:[#allocation7 + $0x30] sm:$0xff] %v1048_v19 }
0x16a3   :  { %1427 = shalt.err (!%p1424_p10)
}
0x16a4   :  { %s1456_s1 = smov 128   ;;  %s1457_s10 = smov 8  }
0x16a5   :  { %1075 = dma.vmem_to_hbm [thread:$0]  %s1070_s22, 1024, %s1810_s8, [#allocation4], %s1456_s1, %s1456_s1, %s1457_s10  }
0x16a6   :  { %1440 = dma.done.wait [#allocation4], 1024  }
0x16a7   :  { %1441 = vsyncadd [#allocation4], 4294966272 }
0x16a8   :  { %1442 = dma.done.wait [#allocation9], 256  }
0x16a9   :  { %1443 = vsyncadd [#allocation9], 4294967040 }
0x16aa   :  { %1105 = vsyncpa [#allocation3], 1 }
0x16ab   :  { %1106 = vsyncpa [#allocation6], 1 }
0x16ac   :  { %1107 = vsyncpa [#allocation4], 1 }
0x16ad   :  { %1108 = vsyncpa [#allocation9], 1 }

</bundles_post_ra>
